<compile_context>
chip_gen: v5e
topology: v5e:2x2
jax: 0.10.0
libtpu: 0.0.40
codegen_flags: <defaults>
</compile_context>

<pallas_src>
import functools

import jax
import jax.numpy as jnp
from jax.experimental import pallas as pl
from jax.experimental.pallas import tpu as pltpu


def _iln_kernel(x_ref, p_ref, o_ref, *, eps, hw):
    # x_ref: (1, C, HW) tile for the current batch element (lane axis = HW).
    x = x_ref[...].astype(jnp.float32)
    C = x.shape[1]
    hw_f = jnp.float32(hw)
    eps_f = jnp.float32(eps)

    # Instance-norm stats: per channel, lane reduce over HW.
    # torch.var default is unbiased (divide by N-1); replicate exactly.
    in_mean = jnp.mean(x, axis=2, keepdims=True)                   # (1, C, 1)
    xc = x - in_mean
    in_sq = jnp.sum(xc * xc, axis=2, keepdims=True)                # (1, C, 1)
    in_var = in_sq / jnp.float32(hw - 1)

    # Layer-norm stats derived *exactly* from the per-channel IN stats:
    #   ln_mean = mean over channels of per-channel means (equal counts)
    #   sum (x - ln_mean)^2 = sum_c [ in_sq_c + HW * (in_mean_c - ln_mean)^2 ]
    ln_mean = jnp.mean(in_mean, axis=1, keepdims=True)             # (1, 1, 1)
    d = in_mean - ln_mean
    ln_sq = jnp.sum(in_sq + hw_f * d * d, axis=1, keepdims=True)   # (1, 1, 1)
    ln_var = ln_sq / jnp.float32(C * hw - 1)

    # Per-channel reciprocal std on the EUP instead of C*HW per-element divides.
    inv_in = jax.lax.rsqrt(in_var + eps_f)                         # (1, C, 1)
    inv_ln = jax.lax.rsqrt(ln_var + eps_f)                         # (1, 1, 1)

    p = p_ref[...].astype(jnp.float32)                             # (3, C, 1)
    rho = p[0:1]                                                   # (1, C, 1)
    gamma = p[1:2]
    beta = p[2:3]

    # Fuse IN/LN mix + affine into one per-channel scale/shift, then a single
    # lane-dense FMA pass over the full tile.
    a_in = rho * inv_in                                            # (1, C, 1)
    a_ln = (1.0 - rho) * inv_ln                                    # (1, C, 1)
    scale = gamma * (a_in + a_ln)                                  # (1, C, 1)
    shift = beta - gamma * (a_in * in_mean + a_ln * ln_mean)       # (1, C, 1)

    o_ref[...] = (x * scale + shift).astype(o_ref.dtype)


def iln_forward(x, rho, gamma, beta, eps=1e-5):
    """ILN forward. x: (B, C, H, W); rho/gamma/beta: (1, C, 1, 1)."""
    B, C, H, W = x.shape
    HW = H * W

    # Lane-dense layout: collapse the spatial dims onto the lane axis.
    x2 = x.reshape(B, C, HW)
    # Single parameter block (rho, gamma, beta stacked), sublane = C.
    params = jnp.stack(
        [rho.reshape(C), gamma.reshape(C), beta.reshape(C)], axis=0
    ).reshape(3, C, 1)

    kernel = functools.partial(_iln_kernel, eps=float(eps), hw=HW)

    # Rough VMEM budget: double-buffered in/out blocks + f32 working copies.
    block_bytes = C * HW * jnp.dtype(x.dtype).itemsize
    vmem_limit = int(min(max(8 * block_bytes + (4 << 20), 16 << 20), 64 << 20))
    # TODO(synk): for very large C*H*W (v7x 64 MiB VMEM), split the grid into
    # channel chunks with a scratch accumulator for the LN stats.

    out = pl.pallas_call(
        kernel,
        out_shape=jax.ShapeDtypeStruct((B, C, HW), x.dtype),
        grid_spec=pltpu.PrefetchScalarGridSpec(
            num_scalar_prefetch=0,
            grid=(B,),
            in_specs=[
                pl.BlockSpec((1, C, HW), lambda b: (b, 0, 0)),
                pl.BlockSpec((3, C, 1), lambda b: (0, 0, 0)),
            ],
            out_specs=pl.BlockSpec((1, C, HW), lambda b: (b, 0, 0)),
        ),
        compiler_params=pltpu.CompilerParams(
            dimension_semantics=("parallel",),
            vmem_limit_bytes=vmem_limit,
        ),
    )(x2, params)
    return out.reshape(B, C, H, W)


def _reference(x, rho, gamma, beta, eps=1e-5):
    x = x.astype(jnp.float32)
    in_mean = jnp.mean(x, axis=(2, 3), keepdims=True)
    in_var = jnp.var(x, axis=(2, 3), keepdims=True, ddof=1)
    out_in = (x - in_mean) / jnp.sqrt(in_var + eps)
    ln_mean = jnp.mean(x, axis=(1, 2, 3), keepdims=True)
    ln_var = jnp.var(x, axis=(1, 2, 3), keepdims=True, ddof=1)
    out_ln = (x - ln_mean) / jnp.sqrt(ln_var + eps)
    out = rho * out_in + (1.0 - rho) * out_ln
    return out * gamma + beta


if __name__ == "__main__":
    B, C, H, W = 2, 4, 16, 16
    key = jax.random.PRNGKey(0)
    kx, kr, kg, kb = jax.random.split(key, 4)
    x = jax.random.normal(kx, (B, C, H, W), dtype=jnp.float32)

    # Case 1: deterministic parameter init matching ILN.__init__
    # (rho=0, gamma=1, beta=0, all shaped (1, C, 1, 1)).
    rho0 = jnp.zeros((1, C, 1, 1), dtype=jnp.float32)
    gamma0 = jnp.ones((1, C, 1, 1), dtype=jnp.float32)
    beta0 = jnp.zeros((1, C, 1, 1), dtype=jnp.float32)

    out0 = jax.block_until_ready(iln_forward(x, rho0, gamma0, beta0))
    ref0 = _reference(x, rho0, gamma0, beta0)
    assert out0.shape == (B, C, H, W)
    assert jnp.allclose(out0, ref0, atol=1e-5, rtol=1e-5)

    # Case 2: non-trivial params so both the IN and LN branches are exercised.
    rho1 = jax.random.uniform(kr, (1, C, 1, 1), dtype=jnp.float32)
    gamma1 = 1.0 + 0.1 * jax.random.normal(kg, (1, C, 1, 1), dtype=jnp.float32)
    beta1 = 0.1 * jax.random.normal(kb, (1, C, 1, 1), dtype=jnp.float32)

    out1 = jax.block_until_ready(iln_forward(x, rho1, gamma1, beta1))
    ref1 = _reference(x, rho1, gamma1, beta1)
    assert jnp.allclose(out1, ref1, atol=1e-5, rtol=1e-5)

    print("KERNEL_OK")
</pallas_src>

<mosaic_0001>
module attributes {stable_mosaic.version = 11 : i64} {
  func.func @_iln_kernel(%arg0: i32, %arg1: memref<1x4x256xf32, #tpu.memory_space<vmem>>, %arg2: memref<3x4x1xf32, #tpu.memory_space<vmem>>, %arg3: memref<1x4x256xf32, #tpu.memory_space<vmem>>) attributes {dimension_semantics = [#tpu.dimension_semantics<parallel>], iteration_bounds = array<i64: 2>, scalar_prefetch = 0 : i64, scratch_operands = 0 : i64, tpu.core_type = #tpu.core_type<tc>, window_params = [{transform_indices = @transform_0, window_bounds = array<i64: 1, 4, 256>}, {pipeline_mode = #tpu.pipeline_mode<synchronous>, transform_indices = @transform_1, window_bounds = array<i64: 3, 4, 1>}, {transform_indices = @transform_2, window_bounds = array<i64: 1, 4, 256>}]} {
    %c0 = arith.constant 0 : index
    %c0_0 = arith.constant 0 : index
    %c0_1 = arith.constant 0 : index
    %0 = vector.load %arg1[%c0, %c0_0, %c0_1] : memref<1x4x256xf32, #tpu.memory_space<vmem>>, vector<1x4x256xf32>
    %cst = arith.constant dense<0.000000e+00> : vector<1x4xf32>
    %1 = vector.multi_reduction <add>, %0, %cst [2] : vector<1x4x256xf32> to vector<1x4xf32>
    %2 = vector.shape_cast %1 : vector<1x4xf32> to vector<1x4x1xf32>
    %cst_2 = arith.constant 2.560000e+02 : f32
    %3 = vector.broadcast %cst_2 : f32 to vector<1x4x1xf32>
    %4 = arith.divf %2, %3 : vector<1x4x1xf32>
    %5 = vector.broadcast %4 : vector<1x4x1xf32> to vector<1x4x256xf32>
    %6 = arith.subf %0, %5 : vector<1x4x256xf32>
    %7 = arith.mulf %6, %6 : vector<1x4x256xf32>
    %cst_3 = arith.constant dense<0.000000e+00> : vector<1x4xf32>
    %8 = vector.multi_reduction <add>, %7, %cst_3 [2] : vector<1x4x256xf32> to vector<1x4xf32>
    %9 = vector.shape_cast %8 : vector<1x4xf32> to vector<1x4x1xf32>
    %cst_4 = arith.constant 2.550000e+02 : f32
    %10 = vector.broadcast %cst_4 : f32 to vector<1x4x1xf32>
    %11 = arith.divf %9, %10 : vector<1x4x1xf32>
    %cst_5 = arith.constant dense<0.000000e+00> : vector<1x1xf32>
    %12 = vector.multi_reduction <add>, %4, %cst_5 [1] : vector<1x4x1xf32> to vector<1x1xf32>
    %13 = vector.shape_cast %12 : vector<1x1xf32> to vector<1x1x1xf32>
    %cst_6 = arith.constant 4.000000e+00 : f32
    %14 = vector.broadcast %cst_6 : f32 to vector<1x1x1xf32>
    %15 = arith.divf %13, %14 : vector<1x1x1xf32>
    %16 = vector.broadcast %15 : vector<1x1x1xf32> to vector<1x4x1xf32>
    %17 = arith.subf %4, %16 : vector<1x4x1xf32>
    %cst_7 = arith.constant 2.560000e+02 : f32
    %18 = vector.broadcast %cst_7 : f32 to vector<1x4x1xf32>
    %19 = arith.mulf %18, %17 : vector<1x4x1xf32>
    %20 = arith.mulf %19, %17 : vector<1x4x1xf32>
    %21 = arith.addf %9, %20 : vector<1x4x1xf32>
    %cst_8 = arith.constant dense<0.000000e+00> : vector<1x1xf32>
    %22 = vector.multi_reduction <add>, %21, %cst_8 [1] : vector<1x4x1xf32> to vector<1x1xf32>
    %23 = vector.shape_cast %22 : vector<1x1xf32> to vector<1x1x1xf32>
    %cst_9 = arith.constant 1.023000e+03 : f32
    %24 = vector.broadcast %cst_9 : f32 to vector<1x1x1xf32>
    %25 = arith.divf %23, %24 : vector<1x1x1xf32>
    %cst_10 = arith.constant 9.99999974E-6 : f32
    %26 = vector.broadcast %cst_10 : f32 to vector<1x4x1xf32>
    %27 = arith.addf %11, %26 : vector<1x4x1xf32>
    %28 = math.rsqrt %27 : vector<1x4x1xf32>
    %cst_11 = arith.constant 9.99999974E-6 : f32
    %29 = vector.broadcast %cst_11 : f32 to vector<1x1x1xf32>
    %30 = arith.addf %25, %29 : vector<1x1x1xf32>
    %31 = math.rsqrt %30 : vector<1x1x1xf32>
    %c0_12 = arith.constant 0 : index
    %c0_13 = arith.constant 0 : index
    %c0_14 = arith.constant 0 : index
    %32 = vector.load %arg2[%c0_12, %c0_13, %c0_14] : memref<3x4x1xf32, #tpu.memory_space<vmem>>, vector<3x4x1xf32>
    %33 = vector.extract_strided_slice %32 {offsets = [0, 0, 0], sizes = [1, 4, 1], strides = [1, 1, 1]} : vector<3x4x1xf32> to vector<1x4x1xf32>
    %34 = vector.extract_strided_slice %32 {offsets = [1, 0, 0], sizes = [1, 4, 1], strides = [1, 1, 1]} : vector<3x4x1xf32> to vector<1x4x1xf32>
    %35 = vector.extract_strided_slice %32 {offsets = [2, 0, 0], sizes = [1, 4, 1], strides = [1, 1, 1]} : vector<3x4x1xf32> to vector<1x4x1xf32>
    %36 = arith.mulf %33, %28 : vector<1x4x1xf32>
    %cst_15 = arith.constant 1.000000e+00 : f32
    %37 = vector.broadcast %cst_15 : f32 to vector<1x4x1xf32>
    %38 = arith.subf %37, %33 : vector<1x4x1xf32>
    %39 = vector.broadcast %31 : vector<1x1x1xf32> to vector<1x4x1xf32>
    %40 = arith.mulf %38, %39 : vector<1x4x1xf32>
    %41 = arith.addf %36, %40 : vector<1x4x1xf32>
    %42 = arith.mulf %34, %41 : vector<1x4x1xf32>
    %43 = arith.mulf %36, %4 : vector<1x4x1xf32>
    %44 = vector.broadcast %15 : vector<1x1x1xf32> to vector<1x4x1xf32>
    %45 = arith.mulf %40, %44 : vector<1x4x1xf32>
    %46 = arith.addf %43, %45 : vector<1x4x1xf32>
    %47 = arith.mulf %34, %46 : vector<1x4x1xf32>
    %48 = arith.subf %35, %47 : vector<1x4x1xf32>
    %49 = vector.broadcast %42 : vector<1x4x1xf32> to vector<1x4x256xf32>
    %50 = arith.mulf %0, %49 : vector<1x4x256xf32>
    %51 = vector.broadcast %48 : vector<1x4x1xf32> to vector<1x4x256xf32>
    %52 = arith.addf %50, %51 : vector<1x4x256xf32>
    %c0_16 = arith.constant 0 : index
    %c0_17 = arith.constant 0 : index
    %c0_18 = arith.constant 0 : index
    %53 = vector.load %arg3[%c0_16, %c0_17, %c0_18] : memref<1x4x256xf32, #tpu.memory_space<vmem>>, vector<1x4x256xf32>
    tpu.vector_store %arg3[%c0_16, %c0_17, %c0_18], %52 {strides = array<i32>} : memref<1x4x256xf32, #tpu.memory_space<vmem>>, vector<1x4x256xf32>,
    return
  }
  func.func @transform_0(%arg0: i32) -> (i32, i32, i32) {
    %c0_i32 = arith.constant 0 : i32
    %c0_i32_0 = arith.constant 0 : i32
    %c0_i32_1 = arith.constant 0 : i32
    return %arg0, %c0_i32, %c0_i32_0 : i32, i32, i32
  }
  func.func @transform_1(%arg0: i32) -> (i32, i32, i32) {
    %c0_i32 = arith.constant 0 : i32
    %c0_i32_0 = arith.constant 0 : i32
    %c0_i32_1 = arith.constant 0 : i32
    %c0_i32_2 = arith.constant 0 : i32
    return %c0_i32, %c0_i32_0, %c0_i32_1 : i32, i32, i32
  }
  func.func @transform_2(%arg0: i32) -> (i32, i32, i32) {
    %c0_i32 = arith.constant 0 : i32
    %c0_i32_0 = arith.constant 0 : i32
    %c0_i32_1 = arith.constant 0 : i32
    return %arg0, %c0_i32, %c0_i32_0 : i32, i32, i32
  }
}

</mosaic_0001>

<bundles_post_ra>
// kernel: tpu_custom_call.1
= control target key start
LH: loop header
LB: loop body
LE: loop exit
PB: predicated region body
PF: predicated region fallthrough
CT: control target
= control target key end

     0   :  { %7 = vsyncpa [#allocation3], 0  ;;  %s750_s0 = inlined_call_operand.hbm [shape: f32[2,4,256], index: 0, kind: input, shape index: {}]   ;;  %s751_s1 = inlined_call_operand.vmem [shape: f32[3,4,1], index: 1, kind: input, shape index: {}]   ;;  %s752_s2 = inlined_call_operand.hbm [shape: f32[2,4,256], index: 2, kind: output, shape index: {}]  }
   0x1   :  { %9 = vsyncpa [#allocation3 + $0x1], 0 }
   0x2   :  { %10 = vsyncpa [#allocation4], 0 }
   0x3   :  { %12 = vsyncpa [#allocation4 + $0x1], 0  ;;  %s588_s9 = smov 0   ;;  %s590_s10 = smov 0  }
   0x4   :  { %s592_s11 = smov 0   ;;  %s594_s12 = smov 0  }
   0x5 LB: > { %s609_s13 = sadd.s32 4294967295, %s565_s12   ;;  %s387_s14 = sadd.s32 4294967294, %s565_s12   ;;  %s565_s12 = sphi %s594_s12, %s762_s12   ;;  %s561_s11 = sphi %s592_s11, %s761_s11   ;;  %s557_s10 = sphi %s590_s10, %s760_s10   ;;  %s553_s9 = sphi %s588_s9, %s759_s9  }
   0x6   : > { %s613_s15 = sadd.s32 1, %s565_s12   ;;  %s25_s16 = sadd.s32 1, %s561_s11 }
   0x7   : > { %s22_s17 = ssub.s32 %s565_s12, %s613_s15  ;;  %p32_p0 = scmp.ne.s32.totalorder %s561_s11, %s557_s10 }
   0x8   : > { %p23_p1 = scmp.eq.s32.totalorder %s22_s17, 0  ;;  %p33_p2 = scmp.eq.s32.totalorder %s565_s12, 0 }
   0x9   : > { %p38_p3 = scmp.ne.s32.totalorder %s557_s10, %s553_s9  ;;  %p39_p4 = scmp.eq.s32.totalorder %s609_s13, 0 }
   0xa   : > { %s625_s18 = scalar_select %p23_p1, %s561_s11, %s25_s16  }
   0xb   : > { %p627_p5 = por %p33_p2, %p32_p0  ;;  %p631_p6 = por %p39_p4, %p38_p3 }
   0xc   : > { %p83_p7 = scmp.eq.s32.totalorder %s609_s13, 1  ;;  %p89_p8 = scmp.eq.s32.totalorder %s387_s14, 1 }
   0xd   : > { %p415_p10 = scmp.lt.s32.totalorder %s565_s12, 2  ;;  %s112_s23 = sand.u32 1, %s561_s11  }
   0xe   : > { %p638_p11 = por %p83_p7, %p32_p0  ;;  %p642_p12 = por %p89_p8, %p38_p3 }
   0xf   : > { %s401_s24 = sshll.u32 %s565_s12, 3  ;;  %s390_s25 = sshll.u32 %s112_s23, 3 }
  0x10   : > { %s121_s28 = scalar_lea.hbm %s750_s0, %s401_s24  ;;  %s116_s30 = scalar_lea.vmem [#allocation2], %s390_s25 }
  0x11   : > { %s123_s29 = sshll.u32 %s121_s28, 4  ;;  %s125_s3 = sshll.u32 %s116_s30, 4  ;;  %s124_s29 = int_to_ptr.hbm [resolvable:$true] %s123_s29  ;;  %s126_s3 = int_to_ptr.vmem [resolvable:$true] %s125_s3 }
  0x12   : > { %p653_p13 = pnand %p415_p10, %p627_p5  ;;  %p393_p0 = scmp.ge.s32.totalorder %s565_s12, 1 }
  0x13   : > { %p130_p1 = scmp.lt.s32.totalorder %s565_s12, 3  ;;  %s113_s5 = scalar_lea.sflag [#allocation3], %s112_s23 }
  0x14   : > { %s469_s6 = sshra.s32 %s124_s29, 4  ;;  %p473_p3 = pneg %p653_p13  ;;  %s470_s6 = int_to_ptr.hbm [resolvable:$true] %s469_s6 }
  0x15   : > { %s471_s7 = scalar_lea.hbm %s470_s6, 8  ;;  %s476_s16 = scalar_lea.hbm %s750_s0, 16 }
  0x16   : > { %p472_p2 = scmp.ne.s32.totalorder %s470_s6, %s471_s7  ;;  %p477_p5 = scmp.lt.s32.totalorder %s470_s6, %s750_s0 }
  0x17   : > { %p478_p8 = scmp.lt.s32.totalorder %s476_s16, %s471_s7 }
  0x18   : > { %p474_p4 = pnand %p473_p3, %p472_p2 }
  0x19   : > { %p479_p10 = por %p478_p8, %p477_p5 }
  0x1a   : > { %p475_p7 = pneg %p474_p4 }
  0x1c   : > { %p480_p9 = pnand %p479_p10, %p475_p7 }
  0x1e   : > { %483 = shalt.err (!%p480_p9)
}
  0x1f   : > { %410 = dma.hbm_to_vmem [thread:$0]  (!%p653_p13), %s124_s29, 128, %s126_s3, %s113_s5  }
  0x20   : > { %p131_p2 = pnand %p393_p0, %p130_p1 }
  0x21   : > { %s674_s23 = sand.u32 (!%p131_p2), 1, %s557_s10  }
  0x22   : > { %134 = sbr.rel (%p131_p2) target bundleno = 476 (0x1dc), region = 28  ;;  %s394_s24 = sshll.u32 (!%p131_p2), %s674_s23, 3 }
  0x23   : > { %s137_s25 = scalar_lea.sflag (!%p131_p2), [#allocation3], %s674_s23  ;;  %s140_s26 = scalar_lea.vmem (!%p131_p2), [#allocation2], %s394_s24 }
  0x27   : > { %544 = dma.done.wait (%p631_p6), %s137_s25, 128  }
  0x28   : > { %546 = vsyncadd (%p631_p6), %s137_s25, 4294967168  ;;  %v684_v0 = vld [vmem:[%s140_s26] sm:$0xff]  ;;  %vm169_vm0 = vcmask 1043456   ;;  %v567_v6 = vmov 256.0   ;;  %v568_v12 = vmov 839922192  }
  0x29   : > { %164 = vst [vmem:[#allocation1] ss:$2 sm:$0xff] %v684_v0  ;;  %457 = vrcp.f32 %v567_v6  ;;  %v185_v13 = vunpack.c.l.s4 %v568_v12  ;;  %v569_v26 = vmov 4.0   ;;  %v570_v34 = vmov 255.0   ;;  %s402_s4 = sshll.u32 %s609_s13, 3  ;;  %s161_s8 = scalar_lea.vmem [#allocation5], %s394_s24 }
  0x2a   : > { %459 = vrcp.f32 %v569_v26  ;;  %v571_v45 = vmov 1023.0   ;;  %v572_v51 = vmov 0   ;;  %s312_s7 = scalar_lea.hbm %s752_s2, %s402_s4  ;;  %s314_s14 = sshll.u32 %s161_s8, 4  ;;  %s315_s14 = int_to_ptr.vmem [resolvable:$true] %s314_s14 }
  0x2b   : > { %v689_v15 = vunpack.c.0.s8 %v185_v13  ;;  %461 = vrcp.f32 %v570_v34  ;;  %455 = vset.pattern.permute.xlu1 %v572_v51  ;;  %456 = vset.pattern.permute.xlu0 %v572_v51  ;;  %s316_s16 = sshll.u32 %s312_s7, 4  ;;  %s301_s13 = scalar_lea.sflag [#allocation4], %s674_s23  ;;  %s317_s16 = int_to_ptr.hbm [resolvable:$true] %s316_s16 }
  0x2c   : > { %463 = vrcp.f32 %v571_v45  ;;  %s513_s17 = sshra.s32 %s317_s16, 4  ;;  %s519_s26 = scalar_lea.hbm %s752_s2, 16  ;;  %s514_s17 = int_to_ptr.hbm [resolvable:$true] %s513_s17 }
  0x2d   : > { %s515_s19 = scalar_lea.hbm %s514_s17, 8  ;;  %p520_p0 = scmp.lt.s32.totalorder %s514_s17, %s752_s2 }
  0x2e   : > { %p516_p6 = scmp.ne.s32.totalorder %s514_s17, %s515_s19  ;;  %p521_p1 = scmp.lt.s32.totalorder %s519_s26, %s515_s19 }
  0x2f   : > { %v458_v7 = vpop.eup %457 }
  0x30   : > { %v165_v1 = vld.sshfl [vmem:[#allocation1] sm:$0xff pattern:$0x75316420]  ;;  %v166_v2 = vld.sshfl [vmem:[#allocation1 + $0x8] sm:$0xff pattern:$0x75316420]  ;;  %vm180_vm1 = vweird.f32 %v458_v7  ;;  %v460_v29 = vpop.eup %459  ;;  %p517_p9 = pnand %p516_p6, %p638_p11  ;;  %p522_p3 = por %p521_p1, %p520_p0 }
  0x31   : > { %v170_v3 = vsel %vm169_vm0, %v165_v1, 0.0  ;;  %v171_v4 = vsel %vm169_vm0, %v166_v2, 0.0  ;;  %v176_v8 = vmul.f32 256.0, %v458_v7  ;;  %v218_v31 = vmul.f32 4.0, %v460_v29  ;;  %v462_v37 = vpop.eup %461 }
  0x32   : > { %v172_v5 = vadd.f32 %v171_v4, %v170_v3  ;;  %vm222_vm2 = vweird.f32 %v460_v29  ;;  %v203_v40 = vmul.f32 255.0, %v462_v37  ;;  %v464_v48 = vpop.eup %463  ;;  %vm207_vm3 = vweird.f32 %v462_v37  ;;  %p518_p13 = pneg %p517_p9 }
  0x33   : > { %v177_v9 = vsub.f32 1.0, %v176_v8  ;;  %v219_v33 = vsub.f32 1.0, %v218_v31  ;;  %v237_v52 = vmul.f32 1023.0, %v464_v48  ;;  %vm241_vm4 = vweird.f32 %v464_v48 }
  0x34   : > { %173 = vadd.xlane.f32.xlu0 %v172_v5  ;;  %v204_v43 = vsub.f32 1.0, %v203_v40  ;;  %p523_p4 = pnand %p522_p3, %p518_p13 }
  0x35   : > { %v178_v10 = vmul.f32 %v458_v7, %v177_v9  ;;  %v220_v36 = vmul.f32 %v460_v29, %v219_v33  ;;  %v238_v56 = vsub.f32 1.0, %v237_v52 }
  0x36   : > { %v205_v46 = vmul.f32 %v462_v37, %v204_v43 }
  0x37   : > { %v179_v11 = vadd.f32 %v458_v7, %v178_v10  ;;  %v221_v39 = vadd.f32 %v460_v29, %v220_v36  ;;  %v239_v62 = vmul.f32 %v464_v48, %v238_v56  ;;  %v268_v36 = vld [vmem:[%s751_s1 + $0x8] sm:$0xf] }
  0x38   : > { %v206_v49 = vadd.f32 %v462_v37, %v205_v46 }
  0x39   : > { %v181_v14 = vsel %vm180_vm1, %v458_v7, %v179_v11  ;;  %v223_v42 = vsel %vm222_vm2, %v460_v29, %v221_v39  ;;  %v240_v2 = vadd.f32 %v464_v48, %v239_v62  ;;  %v267_v29 = vld [vmem:[%s751_s1 + $0x4] sm:$0xf] }
  0x3a   : > { %v208_v53 = vsel %vm207_vm3, %v462_v37, %v206_v49 }
  0x3b   : > { %v242_v6 = vsel %vm241_vm4, %v464_v48, %v240_v2 }
  0xa7   : > { %v174_v16 = vpop.xlane.xlu0 %173 }
  0xa8   : > { %v691_v17 = vmul.f32 %v181_v14, %v174_v16 }
  0xaa   : > { %v187_v18 = vperm.slane %v691_v17, %v689_v15  ;;  %v210_v27 = vsel %vm169_vm0, %v691_v17, 0.0 }
  0xab   : > { %v211_v28 = vrot.slane %v210_v27, 4 }
  0xac   : > { %v189_v19 = vsub.f32 %v684_v0, %v187_v18 }
  0xad   : > { %v212_v30 = vadd.f32 %v211_v28, %v210_v27 }
  0xae   : > { %v190_v20 = vmul.f32 %v189_v19, %v189_v19 }
  0xaf   : > { %v213_v32 = vrot.slane %v212_v30, 2 }
  0xb0   : > { %192 = vst [vmem:[#allocation1] ss:$2 sm:$0xff] %v190_v20 }
  0xb1   : > { %v214_v35 = vadd.f32 %v213_v32, %v212_v30 }
  0xb3   : > { %v215_v38 = vrot.slane %v214_v35, 1 }
  0xb5   : > { %v216_v41 = vadd.f32 %v215_v38, %v214_v35 }
  0xb7   : > { %v193_v21 = vld.sshfl [vmem:[#allocation1] sm:$0xff pattern:$0x75316420]  ;;  %v194_v22 = vld.sshfl [vmem:[#allocation1 + $0x8] sm:$0xff pattern:$0x75316420]  ;;  %v224_v44 = vmul.f32 %v223_v42, %v216_v41 }
  0xb8   : > { %v197_v23 = vsel %vm169_vm0, %v193_v21, 0.0  ;;  %v198_v24 = vsel %vm169_vm0, %v194_v22, 0.0 }
  0xb9   : > { %v199_v25 = vadd.f32 %v198_v24, %v197_v23  ;;  %v225_v47 = vsub.f32 %v691_v17, %v224_v44  ;;  %v266_v23 = vld [vmem:[%s751_s1] sm:$0xf] }
  0xba   : > { %v270_v24 = vsub.f32 1.0, %v266_v23 }
  0xbb   : > { %200 = vadd.xlane.f32.xlu0 %v199_v25  ;;  %v226_v50 = vmul.f32 256.0, %v225_v47 }
  0xbd   : > { %v227_v54 = vmul.f32 %v226_v50, %v225_v47 }
 0x12e   : > { %v201_v55 = vpop.xlane.xlu0 %200 }
 0x12f   : > { %v209_v57 = vmul.f32 %v208_v53, %v201_v55  ;;  %v228_v58 = vadd.f32 %v227_v54, %v201_v55 }
 0x131   : > { %v229_v59 = vsel %vm169_vm0, %v228_v58, 0.0  ;;  %v244_v60 = vadd.f32 1e-05, %v209_v57 }
 0x132   : > { %v230_v61 = vrot.slane %v229_v59, 4 }
 0x133   : > { %465 = vrsqrt.f32 %v244_v60  ;;  %vm251_vm6 = vweird.f32 %v244_v60 }
 0x134   : > { %v231_v63 = vadd.f32 %v230_v61, %v229_v59 }
 0x136   : > { %v232_v1 = vrot.slane %v231_v63, 2 }
 0x138   : > { %v233_v3 = vadd.f32 %v232_v1, %v231_v63 }
 0x139   : > { %v466_v4 = vpop.eup %465 }
 0x13a   : > { %v234_v5 = vrot.slane %v233_v3, 1  ;;  %v246_v7 = vmul.f32 %v466_v4, %v244_v60  ;;  %vm252_vm5 = vweird.f32 %v466_v4 }
 0x13b   : > { %vm253_vm7 = vmor %vm251_vm6, %vm252_vm5 }
 0x13c   : > { %v235_v8 = vadd.f32 %v234_v5, %v233_v3  ;;  %v247_v10 = vmul.f32 %v466_v4, %v246_v7 }
 0x13e   : > { %v243_v9 = vmul.f32 %v242_v6, %v235_v8  ;;  %v248_v12 = vmul.f32 0.5, %v247_v10 }
 0x140   : > { %v255_v11 = vadd.f32 1e-05, %v243_v9  ;;  %v249_v13 = vsub.f32 1.5, %v248_v12 }
 0x142   : > { %467 = vrsqrt.f32 %v255_v11  ;;  %v250_v18 = vmul.f32 %v466_v4, %v249_v13  ;;  %vm262_vm9 = vweird.f32 %v255_v11 }
 0x144   : > { %v254_v21 = vsel %vm253_vm7, %v466_v4, %v250_v18 }
 0x145   : > { %v269_v26 = vmul.f32 %v266_v23, %v254_v21 }
 0x147   : > { %v274_v31 = vmul.f32 %v269_v26, %v691_v17 }
 0x148   : > { %v468_v14 = vpop.eup %467 }
 0x149   : > { %v257_v16 = vmul.f32 %v468_v14, %v255_v11  ;;  %vm263_vm8 = vweird.f32 %v468_v14 }
 0x14a   : > { %vm264_vm10 = vmor %vm262_vm9, %vm263_vm8 }
 0x14b   : > { %v258_v19 = vmul.f32 %v468_v14, %v257_v16 }
 0x14d   : > { %v259_v20 = vmul.f32 0.5, %v258_v19 }
 0x14f   : > { %v260_v22 = vsub.f32 1.5, %v259_v20 }
 0x151   : > { %v261_v25 = vmul.f32 %v468_v14, %v260_v22 }
 0x153   : > { %v265_v27 = vsel %vm264_vm10, %v468_v14, %v261_v25 }
 0x154   : > { %v271_v28 = vmul.f32 %v270_v24, %v265_v27 }
 0x156   : > { %v272_v30 = vadd.f32 %v271_v28, %v269_v26  ;;  %v275_v32 = vmul.f32 %v271_v28, %v224_v44 }
 0x158   : > { %v273_v33 = vmul.f32 %v272_v30, %v267_v29  ;;  %v276_v34 = vadd.f32 %v275_v32, %v274_v31 }
 0x15a   : > { %281 = vperm.xlu1 %455, %v273_v33   ;;  %v277_v35 = vmul.f32 %v276_v34, %v267_v29 }
 0x15c   : > { %v278_v37 = vsub.f32 %v268_v36, %v277_v35 }
 0x162   : > { %291 = vperm.xlu1 %455, %v278_v37  }
 0x1cc   : > { %v282_v38 = vpop.permute.xlu1 %281 }
 0x1cd   : > { %v286_v39 = vperm.slane %v282_v38, %v689_v15 }
 0x1cf   : > { %v288_v40 = vmul.f32 %v286_v39, %v684_v0 }
 0x1d4   : > { %v292_v17 = vpop.permute.xlu1 %291 }
 0x1d5   : > { %v296_v41 = vperm.slane %v292_v17, %v689_v15 }
 0x1d7   : > { %v298_v42 = vadd.f32 %v296_v41, %v288_v40 }
 0x1d9   : > { %299 = vst [vmem:[%s161_s8] sm:$0xff] %v298_v42 }
 0x1da   : > { %526 = shalt.err (!%p523_p4)
}
 0x1db   : > { %405 = dma.vmem_to_hbm [thread:$0]  (%p638_p11), %s315_s14, 128, %s317_s16, %s301_s13  }
 0x1dc PF: > { %s328_s23 = sand.u32 1, %s553_s9   ;;  %p758_p7 = scmp.ge.s32.totalorder %s565_s12, 2 }
 0x1dd   : > { %s329_s28 = scalar_lea.sflag [#allocation4], %s328_s23 }
 0x1de   : > { %p412_p5 = pnand %p758_p7, %p642_p12 }
 0x1e0   : > { %p413_p8 = pneg %p412_p5 }
 0x1e2   : > { %548 = dma.done.wait (%p413_p8), %s329_s28, 128  }
 0x1e3   : > { %550 = vsyncadd (%p413_p8), %s329_s28, 4294967168  ;;  %p15_p10 = scmp.ge.s32.totalorder %s613_s15, 4   ;;  %s759_s9 = smov %s557_s10 }
 0x1e4   : > { %s760_s10 = smov %s561_s11  ;;  %s761_s11 = smov %s625_s18 }
 0x1e5   : > { %s762_s12 = smov %s613_s15  ;;  %17 = sbr.rel (!%p15_p10) target bundleno = 5 (0x5), region = 73 }
 0x1ea   :  { %335 = vsyncpa [#allocation3], 1 }
 0x1eb   :  { %337 = vsyncpa [#allocation3 + $0x1], 1 }
 0x1ec   :  { %338 = vsyncpa [#allocation4], 1 }
 0x1ed   :  { %340 = vsyncpa [#allocation4 + $0x1], 1 }

</bundles_post_ra>
